<compile_context>
chip_gen: v7x
topology: tpu7x:2x2x1
jax: 0.10.0
libtpu: 0.0.40
codegen_flags: <defaults>
</compile_context>

<pallas_src>
import functools
import math

import jax
import jax.numpy as jnp
from jax.experimental import pallas as pl
from jax.experimental.pallas import tpu as pltpu

_LANES = 128
_MAX_BLOCK_ROWS = 8192  # (8192, 128) f32 == 4 MiB per input block


def _focal_kernel(p_ref, l_ref, loss_ref, cnt_ref, *, alpha, gamma,
                  tail_valid, has_tail):
    """One grid step: per-lane partial sums of loss contribution and label count."""
    p = p_ref[...].astype(jnp.float32)
    lab = l_ref[...].astype(jnp.float32)

    # pc = clip(p) is shared by both focal branches.
    pc = jnp.clip(p, 0.0001, 0.9999)
    one_m_pc = 1.0 - pc
    if gamma == 2.0:  # VPU square instead of EUP pow (= exp(gamma*log(x)))
        f1 = one_m_pc * one_m_pc
        f0 = pc * pc
    else:
        f1 = jnp.power(one_m_pc, gamma)
        f0 = jnp.power(pc, gamma)

    # Fused single-log form (assumes binary {0,1} labels; cross-branch clip
    # constants are added back analytically in the wrapper).
    is_one = lab == 1.0
    z = jnp.where(is_one, pc, one_m_pc)
    w = jnp.where(is_one, alpha * f1, (1.0 - alpha) * f0)
    contrib = w * jnp.log(z)

    def _reduce(c, lb):
        loss_ref[...] = jnp.sum(c, axis=0, keepdims=True)
        cnt_ref[...] = jnp.sum(lb, axis=0, keepdims=True)

    if has_tail:
        i = pl.program_id(0)
        last = pl.num_programs(0) - 1

        @pl.when(i == last)
        def _():
            # Tail-only mask: local flattened index vs. a baked constant.
            _, lanes = contrib.shape
            local_idx = (
                jax.lax.broadcasted_iota(jnp.int32, contrib.shape, 0) * lanes
                + jax.lax.broadcasted_iota(jnp.int32, contrib.shape, 1))
            valid = local_idx < tail_valid
            _reduce(jnp.where(valid, contrib, 0.0),
                    jnp.where(valid, lab, 0.0))

        @pl.when(i != last)
        def _():
            _reduce(contrib, lab)
    else:
        _reduce(contrib, lab)


def focal_loss_pallas(preds, labels, alpha=0.25, gamma=2.0,
                      max_block_rows=_MAX_BLOCK_ROWS):
    n = int(preds.size)
    p = preds.reshape(-1)
    l = labels.reshape(-1)

    # Minimal lane pad (only when n is not a multiple of 128).  Padded labels
    # are exactly 0.0 (do not perturb the label count); padded loss
    # contributions are masked in the tail block.
    rem = (-n) % _LANES
    if rem:
        p = jnp.pad(p, (0, rem))
        l = jnp.pad(l, (0, rem))
    rows = (n + rem) // _LANES

    p2 = p.reshape(rows, _LANES)
    l2 = l.reshape(rows, _LANES)

    # Block-row choice:
    #   * tiny inputs (rows <= 8): one block equal to the full extent (legal).
    #   * otherwise: split into >= 2 blocks (8-aligned) so v7x megacore can
    #     shard the "parallel" grid axis, capped at max_block_rows (4 MiB/blk).
    if rows <= 8:
        bm = rows
    else:
        bm = min(max_block_rows, ((-(-rows // 2)) + 7) // 8 * 8)
    num_blocks = pl.cdiv(rows, bm)

    padded_total = num_blocks * bm * _LANES
    has_tail = padded_total > n                       # any invalid elements?
    tail_valid = n - (num_blocks - 1) * bm * _LANES   # valid elems in last block

    kernel = functools.partial(
        _focal_kernel,
        alpha=float(alpha),
        gamma=float(gamma),
        tail_valid=int(tail_valid),
        has_tail=bool(has_tail),
    )

    loss_part, cnt_part = pl.pallas_call(
        kernel,
        out_shape=(
            jax.ShapeDtypeStruct((num_blocks, _LANES), jnp.float32),
            jax.ShapeDtypeStruct((num_blocks, _LANES), jnp.float32),
        ),
        grid_spec=pltpu.PrefetchScalarGridSpec(
            num_scalar_prefetch=0,
            grid=(num_blocks,),
            in_specs=[
                pl.BlockSpec((bm, _LANES), lambda i: (i, 0)),
                pl.BlockSpec((bm, _LANES), lambda i: (i, 0)),
            ],
            out_specs=[
                pl.BlockSpec((1, _LANES), lambda i: (i, 0)),
                pl.BlockSpec((1, _LANES), lambda i: (i, 0)),
            ],
        ),
        compiler_params=pltpu.CompilerParams(
            dimension_semantics=("parallel",),
            vmem_limit_bytes=32 * 1024 * 1024,  # 16 MiB double-buffered inputs + headroom
        ),
    )(p2, l2)

    kernel_sum = jnp.sum(loss_part)
    n1 = jnp.sum(cnt_part)  # count of lab == 1 (binary labels)

    # Restore the cross-branch clip-boundary constants dropped by the fusion:
    #   lab==1 elements each drop (1-alpha) * (1e-4)^g * log(1 - 1e-4)
    #   lab==0 elements each drop   alpha   * (1e-4)^g * log(0.9999)
    c = (1e-4 ** float(gamma)) * math.log(0.9999)
    dropped = c * (n1 * (1.0 - float(alpha)) + (n - n1) * float(alpha))

    # loss = -mean(a*(1-pt1)^g*log(pt1)) - mean((1-a)*pt0^g*log(1-pt0))
    return -(kernel_sum + dropped) / jnp.float32(n)


def focal_loss_ref(preds, labels, alpha=0.25, gamma=2.0):
    p = preds.reshape(-1, 1).astype(jnp.float32)
    l = labels.reshape(-1, 1).astype(jnp.float32)
    pt1 = jnp.where(l == 1.0, p, jnp.ones_like(p))
    pt0 = jnp.where(l == 0.0, p, jnp.zeros_like(p))
    pt1 = jnp.clip(pt1, 0.0001, 0.9999)
    pt0 = jnp.clip(pt0, 0.0001, 0.9999)
    return (
        -jnp.mean(alpha * jnp.power(1.0 - pt1, gamma) * jnp.log(pt1))
        - jnp.mean((1.0 - alpha) * jnp.power(pt0, gamma) * jnp.log(1.0 - pt0))
    )


if __name__ == "__main__":
    key = jax.random.PRNGKey(0)
    kp, kl = jax.random.split(key)

    # NCHW inputs; num_classes=1 in the module's __init__ -> C=1.
    shape = (2, 1, 16, 16)
    preds = jax.random.uniform(kp, shape, dtype=jnp.float32, minval=0.001, maxval=0.999)
    labels = jax.random.bernoulli(kl, 0.3, shape).astype(jnp.float32)

    # Deterministic parameter init per module __init__: alpha = zeros(1); alpha[0] += 0.25
    alpha = 0.25
    gamma = 2.0

    loss = focal_loss_pallas(preds, labels, alpha=alpha, gamma=gamma)
    loss = jax.block_until_ready(loss)

    ref = focal_loss_ref(preds, labels, alpha=alpha, gamma=gamma)
    assert jnp.allclose(loss, ref, rtol=1e-5, atol=1e-6), (loss, ref)

    print("KERNEL_OK")
</pallas_src>

<mosaic_0001>
module attributes {stable_mosaic.version = 11 : i64} {
  func.func @_focal_kernel(%arg0: i32, %arg1: memref<4x128xf32, #tpu.memory_space<vmem>>, %arg2: memref<4x128xf32, #tpu.memory_space<vmem>>, %arg3: memref<1x128xf32, #tpu.memory_space<vmem>>, %arg4: memref<1x128xf32, #tpu.memory_space<vmem>>) attributes {dimension_semantics = [#tpu.dimension_semantics<parallel>], iteration_bounds = array<i64: 1>, scalar_prefetch = 0 : i64, scratch_operands = 0 : i64, tpu.core_type = #tpu.core_type<tc>, window_params = [{transform_indices = @transform_0, window_bounds = array<i64: 4, 128>}, {transform_indices = @transform_1, window_bounds = array<i64: 4, 128>}, {transform_indices = @transform_2, window_bounds = array<i64: 1, 128>}, {transform_indices = @transform_3, window_bounds = array<i64: 1, 128>}]} {
    %c0 = arith.constant 0 : index
    %c0_0 = arith.constant 0 : index
    %0 = vector.load %arg1[%c0, %c0_0] : memref<4x128xf32, #tpu.memory_space<vmem>>, vector<4x128xf32>
    %c0_1 = arith.constant 0 : index
    %c0_2 = arith.constant 0 : index
    %1 = vector.load %arg2[%c0_1, %c0_2] : memref<4x128xf32, #tpu.memory_space<vmem>>, vector<4x128xf32>
    %cst = arith.constant 9.99999974E-5 : f32
    %cst_3 = arith.constant 0.999899983 : f32
    %2 = vector.broadcast %cst : f32 to vector<4x128xf32>
    %3 = arith.maximumf %2, %0 : vector<4x128xf32>
    %4 = vector.broadcast %cst_3 : f32 to vector<4x128xf32>
    %5 = arith.minimumf %4, %3 : vector<4x128xf32>
    %cst_4 = arith.constant 1.000000e+00 : f32
    %6 = vector.broadcast %cst_4 : f32 to vector<4x128xf32>
    %7 = arith.subf %6, %5 : vector<4x128xf32>
    %8 = arith.mulf %7, %7 : vector<4x128xf32>
    %9 = arith.mulf %5, %5 : vector<4x128xf32>
    %cst_5 = arith.constant 1.000000e+00 : f32
    %10 = vector.broadcast %cst_5 : f32 to vector<4x128xf32>
    %11 = arith.cmpf oeq, %1, %10 : vector<4x128xf32>
    %12 = arith.select %11, %5, %7 : vector<4x128xi1>, vector<4x128xf32>
    %cst_6 = arith.constant 2.500000e-01 : f32
    %13 = vector.broadcast %cst_6 : f32 to vector<4x128xf32>
    %14 = arith.mulf %13, %8 : vector<4x128xf32>
    %cst_7 = arith.constant 7.500000e-01 : f32
    %15 = vector.broadcast %cst_7 : f32 to vector<4x128xf32>
    %16 = arith.mulf %15, %9 : vector<4x128xf32>
    %17 = arith.select %11, %14, %16 : vector<4x128xi1>, vector<4x128xf32>
    %18 = math.log %12 : vector<4x128xf32>
    %19 = arith.mulf %17, %18 : vector<4x128xf32>
    %cst_8 = arith.constant dense<0.000000e+00> : vector<128xf32>
    %20 = vector.multi_reduction <add>, %19, %cst_8 [0] : vector<4x128xf32> to vector<128xf32>
    %21 = vector.shape_cast %20 : vector<128xf32> to vector<1x128xf32>
    %c0_9 = arith.constant 0 : index
    %c0_10 = arith.constant 0 : index
    %22 = vector.load %arg3[%c0_9, %c0_10] : memref<1x128xf32, #tpu.memory_space<vmem>>, vector<1x128xf32>
    tpu.vector_store %arg3[%c0_9, %c0_10], %21 {strides = array<i32>} : memref<1x128xf32, #tpu.memory_space<vmem>>, vector<1x128xf32>,
    %cst_11 = arith.constant dense<0.000000e+00> : vector<128xf32>
    %23 = vector.multi_reduction <add>, %1, %cst_11 [0] : vector<4x128xf32> to vector<128xf32>
    %24 = vector.shape_cast %23 : vector<128xf32> to vector<1x128xf32>
    %c0_12 = arith.constant 0 : index
    %c0_13 = arith.constant 0 : index
    %25 = vector.load %arg4[%c0_12, %c0_13] : memref<1x128xf32, #tpu.memory_space<vmem>>, vector<1x128xf32>
    tpu.vector_store %arg4[%c0_12, %c0_13], %24 {strides = array<i32>} : memref<1x128xf32, #tpu.memory_space<vmem>>, vector<1x128xf32>,
    return
  }
  func.func @transform_0(%arg0: i32) -> (i32, i32) {
    %c0_i32 = arith.constant 0 : i32
    %c0_i32_0 = arith.constant 0 : i32
    return %arg0, %c0_i32 : i32, i32
  }
  func.func @transform_1(%arg0: i32) -> (i32, i32) {
    %c0_i32 = arith.constant 0 : i32
    %c0_i32_0 = arith.constant 0 : i32
    return %arg0, %c0_i32 : i32, i32
  }
  func.func @transform_2(%arg0: i32) -> (i32, i32) {
    %c0_i32 = arith.constant 0 : i32
    %c0_i32_0 = arith.constant 0 : i32
    return %arg0, %c0_i32 : i32, i32
  }
  func.func @transform_3(%arg0: i32) -> (i32, i32) {
    %c0_i32 = arith.constant 0 : i32
    %c0_i32_0 = arith.constant 0 : i32
    return %arg0, %c0_i32 : i32, i32
  }
}

</mosaic_0001>

<bundles_post_ra>
// kernel: tpu_custom_call.1
= control target key start
LH: loop header
LB: loop body
LE: loop exit
PB: predicated region body
PF: predicated region fallthrough
CT: control target
= control target key end

     0   :  { %9 = vsyncpa [#allocation3], 0  ;;  %s279_s0 = inlined_call_operand.hbm [shape: f32[4,128], index: 0, kind: input, shape index: {}]   ;;  %s280_s1 = inlined_call_operand.hbm [shape: f32[4,128], index: 1, kind: input, shape index: {}]   ;;  %s281_s2 = inlined_call_operand.hbm [shape: f32[1,128], index: 2, kind: output, shape index: {0}]   ;;  %s282_s3 = inlined_call_operand.hbm [shape: f32[1,128], index: 3, kind: output, shape index: {1}]  }
   0x1   :  { %10 = vsyncpa [#allocation6], 0 }
   0x2   :  { %11 = vsyncpa [#allocation4], 0 }
   0x3   :  { %12 = vsyncpa [#allocation9], 0  ;;  %s203_s12 = smov [#allocation2]   ;;  %s204_s14 = smov [#allocation5]  }
   0x4   :  { %s19_s13 = sshll.u32 %s203_s12, 4  ;;  %s29_s15 = sshll.u32 %s204_s14, 4  ;;  %s20_s13 = int_to_ptr.vmem [resolvable:$true] %s19_s13  ;;  %s30_s15 = int_to_ptr.vmem [resolvable:$true] %s29_s15 }
   0x5   :  { %s107_s18 = scalar_lea.hbm %s279_s0, 64 }
   0x6   :  { %p108_p0 = scmp.ne.s32.totalorder %s279_s0, %s107_s18  ;;  %p111_p1 = scmp.lt.u32.totalorder %s107_s18, %s279_s0 }
   0x8   :  { %p113_p2 = pnand %p111_p1, %p108_p0 }
   0xa   :  { %116 = shalt.err (!%p113_p2)
}
   0xb   :  { %s117_s23 = scalar_lea.vmem %s20_s13, 64  ;;  %p122_p4 = scmp.lt.s32.totalorder %s20_s13, %s20_s13 }
   0xc   :  { %p118_p3 = scmp.ne.s32.totalorder %s20_s13, %s117_s23  ;;  %p123_p5 = scmp.lt.s32.totalorder %s117_s23, %s117_s23 }
   0xe   :  { %p124_p6 = por %p123_p5, %p122_p4 }
  0x10   :  { %p125_p7 = pnand %p124_p6, %p118_p3 }
  0x12   :  { %128 = shalt.err (!%p125_p7)
}
  0x13   :  { %22 = dma.hbm_to_vmem [thread:$0]  %s279_s0, 64, %s20_s13, [#allocation3]  }
  0x14   :  { %s129_s28 = scalar_lea.hbm %s280_s1, 64 }
  0x15   :  { %p130_p8 = scmp.ne.s32.totalorder %s280_s1, %s129_s28  ;;  %p133_p9 = scmp.lt.u32.totalorder %s129_s28, %s280_s1 }
  0x17   :  { %p135_p10 = pnand %p133_p9, %p130_p8 }
  0x19   :  { %138 = shalt.err (!%p135_p10)
}
  0x1a   :  { %s139_s6 = scalar_lea.vmem %s30_s15, 64  ;;  %p144_p12 = scmp.lt.s32.totalorder %s30_s15, %s30_s15 }
  0x1b   :  { %p140_p11 = scmp.ne.s32.totalorder %s30_s15, %s139_s6  ;;  %p145_p13 = scmp.lt.s32.totalorder %s139_s6, %s139_s6 }
  0x1d   :  { %p146_p0 = por %p145_p13, %p144_p12 }
  0x1f   :  { %p147_p1 = pnand %p146_p0, %p140_p11 }
  0x21   :  { %150 = shalt.err (!%p147_p1)
}
  0x22   :  { %32 = dma.hbm_to_vmem [thread:$0]  %s280_s1, 64, %s30_s15, [#allocation6]  }
  0x23   :  { %195 = dma.done.wait [#allocation3], 64  }
  0x24   :  { %196 = vsyncadd [#allocation3], 4294967232 }
  0x25   :  { %197 = dma.done.wait [#allocation6], 64  }
  0x26   :  { %198 = vsyncadd [#allocation6], 4294967232  ;;  %vm54_vm0 = vcmask 1043456   ;;  %v39_v0 = vld [vmem:[#allocation2] sm:$0xf]  ;;  %s205_s1 = smov [#allocation8]  }
  0x27   :  { %v40_v1 = vld [vmem:[#allocation5] sm:$0xf]  ;;  %v41_v2 = vmax.f32 %v39_v0, 0.0001  ;;  %s87_s8 = sshll.u32 %s205_s1, 4  ;;  %s88_s8 = int_to_ptr.vmem [resolvable:$true] %s87_s8 }
  0x28   :  { %v63_v3 = vsel %vm54_vm0, %v40_v1, 0.0  ;;  %vm46_vm1 = vcmp.eq.f32.partialorder %v40_v1, 1.0  ;;  %s151_s9 = scalar_lea.vmem %s88_s8, 16  ;;  %s155_s10 = scalar_lea.vmem %s88_s8, 32 }
  0x29   :  { %v64_v4 = vrot.slane %v63_v3, 4  ;;  %v42_v5 = vmin.f32 %v41_v2, 0.9999  ;;  %p152_p2 = scmp.ne.s32.totalorder %s88_s8, %s151_s9  ;;  %p156_p3 = scmp.lt.s32.totalorder %s88_s8, %s88_s8 }
  0x2a   :  { %p157_p4 = scmp.lt.s32.totalorder %s155_s10, %s151_s9 }
  0x2b   :  { %v65_v6 = vadd.f32 %v64_v4, %v63_v3  ;;  %v43_v7 = vsub.f32 1.0, %v42_v5  ;;  %v45_v12 = vmul.f32 %v42_v5, %v42_v5 }
  0x2c   :  { %p158_p5 = por %p157_p4, %p156_p3 }
  0x2d   :  { %v66_v8 = vrot.slane %v65_v6, 2  ;;  %v47_v9 = vsel %vm46_vm1, %v42_v5, %v43_v7  ;;  %v44_v11 = vmul.f32 %v43_v7, %v43_v7  ;;  %v49_v16 = vmul.f32 0.75, %v45_v12 }
  0x2e   :  { %105 = vlog2.f32 %v47_v9  ;;  %p159_p6 = pnand %p158_p5, %p152_p2 }
  0x2f   :  { %v67_v10 = vadd.f32 %v66_v8, %v65_v6  ;;  %v48_v15 = vmul.f32 0.25, %v44_v11 }
  0x31   :  { %v68_v13 = vrot.slane %v67_v10, 1 }
  0x33   :  { %v69_v14 = vadd.f32 %v68_v13, %v67_v10 }
  0x35   :  { %70 = vst [vmem:[#allocation8] sm:$0x1] %v69_v14 }
  0x36   :  { %162 = shalt.err (!%p159_p6)
}
  0x37   :  { %s163_s13 = scalar_lea.hbm %s282_s3, 16 }
  0x38   :  { %p164_p7 = scmp.ne.s32.totalorder %s282_s3, %s163_s13  ;;  %p167_p8 = scmp.lt.u32.totalorder %s163_s13, %s282_s3 }
  0x3a   :  { %p169_p9 = pnand %p167_p8, %p164_p7 }
  0x3c   :  { %172 = shalt.err (!%p169_p9)
}
  0x3d   :  { %90 = dma.vmem_to_hbm [thread:$0]  %s88_s8, 16, %s282_s3, [#allocation9]   ;;  %v106_v17 = vpop.eup %105  ;;  %v50_v18 = vsel %vm46_vm1, %v48_v15, %v49_v16 }
  0x3e   :  { %v52_v19 = vmul.f32 0.6931472, %v106_v17  ;;  %s206_s20 = smov [#allocation7]  }
  0x3f   :  { %s77_s21 = sshll.u32 %s206_s20, 4  ;;  %s78_s21 = int_to_ptr.vmem [resolvable:$true] %s77_s21 }
  0x40   :  { %v53_v20 = vmul.f32 %v52_v19, %v50_v18  ;;  %s173_s22 = scalar_lea.vmem %s78_s21, 16  ;;  %s177_s3 = scalar_lea.vmem %s78_s21, 32 }
  0x41   :  { %p174_p10 = scmp.ne.s32.totalorder %s78_s21, %s173_s22  ;;  %p178_p11 = scmp.lt.s32.totalorder %s78_s21, %s78_s21 }
  0x42   :  { %v55_v21 = vsel %vm54_vm0, %v53_v20, 0.0  ;;  %p179_p12 = scmp.lt.s32.totalorder %s177_s3, %s173_s22 }
  0x43   :  { %v56_v22 = vrot.slane %v55_v21, 4 }
  0x44   :  { %p180_p13 = por %p179_p12, %p178_p11 }
  0x45   :  { %v57_v23 = vadd.f32 %v56_v22, %v55_v21 }
  0x46   :  { %p181_p0 = pnand %p180_p13, %p174_p10 }
  0x47   :  { %v58_v24 = vrot.slane %v57_v23, 2 }
  0x49   :  { %v59_v25 = vadd.f32 %v58_v24, %v57_v23 }
  0x4b   :  { %v60_v26 = vrot.slane %v59_v25, 1 }
  0x4d   :  { %v61_v27 = vadd.f32 %v60_v26, %v59_v25 }
  0x4f   :  { %62 = vst [vmem:[#allocation7] sm:$0x1] %v61_v27 }
  0x50   :  { %184 = shalt.err (!%p181_p0)
}
  0x51   :  { %s185_s25 = scalar_lea.hbm %s281_s2, 16 }
  0x52   :  { %p186_p1 = scmp.ne.s32.totalorder %s281_s2, %s185_s25  ;;  %p189_p2 = scmp.lt.u32.totalorder %s185_s25, %s281_s2 }
  0x54   :  { %p191_p3 = pnand %p189_p2, %p186_p1 }
  0x56   :  { %194 = shalt.err (!%p191_p3)
}
  0x57   :  { %80 = dma.vmem_to_hbm [thread:$0]  %s78_s21, 16, %s281_s2, [#allocation4]  }
  0x58   :  { %199 = dma.done.wait [#allocation4], 16  }
  0x59   :  { %200 = vsyncadd [#allocation4], 4294967280 }
  0x5a   :  { %201 = dma.done.wait [#allocation9], 16  }
  0x5b   :  { %202 = vsyncadd [#allocation9], 4294967280 }
  0x5c   :  { %97 = vsyncpa [#allocation3], 1 }
  0x5d   :  { %98 = vsyncpa [#allocation6], 1 }
  0x5e   :  { %99 = vsyncpa [#allocation4], 1 }
  0x5f   :  { %100 = vsyncpa [#allocation9], 1 }

</bundles_post_ra>
